<compile_context>
chip_gen: v6e
topology: v6e:2x2x1
jax: 0.10.0
libtpu: 0.0.40
codegen_flags: <defaults>
</compile_context>

<pallas_src>
import math

import jax
import jax.numpy as jnp
from jax import lax
from jax.experimental import pallas as pl
from jax.experimental.pallas import tpu as pltpu


def _round_up(x, m):
    return ((x + m - 1) // m) * m


def _dense_kernel(x_ref, w_ref, b_ref, o_ref):
    # x_ref: (tile_n, d_in)   w_ref: (tile_no, d_in)   b_ref: (1, tile_no)
    # o_ref: (tile_n, tile_no)
    acc = lax.dot_general(
        x_ref[...], w_ref[...],
        dimension_numbers=(((1,), (1,)), ((), ())),   # contract d_in on both sides
        preferred_element_type=jnp.float32)
    o_ref[...] = (acc + b_ref[...].astype(jnp.float32)).astype(o_ref.dtype)


def position_feed_forward_2d(x, weight, bias, *, tile_n=512):
    """Position-wise Linear: y[..., :] = x[..., :] @ weight.T + bias.

    x:      (..., d_in)  channels-last, e.g. (B, H, W, d_in)
    weight: (d_out, d_in)  (PyTorch nn.Linear layout, used as-is)
    bias:   (d_out,)
    """
    *lead, d_in = x.shape
    d_out, d_in_w = weight.shape
    assert d_in_w == d_in, "weight feature dim must match x's last dim"
    N = 1
    for s in lead:
        N *= s

    # ---- tiling choices ------------------------------------------------------
    # Lane-dense output: pad d_out to a multiple of 128 and tile it in <=512-wide
    # blocks so the resident weight block is (tile_no, d_in), never the full d_out.
    tile_no = min(512, _round_up(d_out, 128))
    d_out_p = _round_up(d_out, tile_no)
    n_j = d_out_p // tile_no

    # Large N tiles for HBM bandwidth, but keep >=2 grid steps so a v7x chip
    # can shard the parallel axis across both TensorCores.
    tile_n = max(8, _round_up(tile_n, 8))
    while tile_n > 8 and _round_up(N, tile_n) // tile_n < 2:
        tile_n //= 2
    N_p = _round_up(N, tile_n)
    n_i = N_p // tile_n

    # ---- wrapper-side zero padding (sliced off afterwards) -------------------
    x2d = x.reshape(N, d_in)
    if N_p != N:
        x2d = jnp.pad(x2d, ((0, N_p - N), (0, 0)))
    w2d = weight
    b2d = bias.reshape(1, d_out)
    if d_out_p != d_out:
        w2d = jnp.pad(w2d, ((0, d_out_p - d_out), (0, 0)))
        b2d = jnp.pad(b2d, ((0, 0), (0, d_out_p - d_out)))

    # ---- VMEM budget ----------------------------------------------------------
    w_bufs = 1 if n_j == 1 else 2
    itemsize = jnp.dtype(x.dtype).itemsize
    est = (2 * tile_n * d_in * itemsize            # x tile, double-buffered
           + w_bufs * tile_no * d_in * itemsize    # weight tile
           + 2 * tile_no * itemsize                # bias tile
           + 2 * tile_n * tile_no * itemsize)      # output tile, double-buffered
    vmem_limit = int(min(max(2 * est + (8 << 20), 32 << 20), 56 << 20))

    # ---- BlockSpecs -----------------------------------------------------------
    x_spec = pl.BlockSpec((tile_n, d_in), lambda i, j: (i, 0))
    if n_j == 1:
        # Constant block index across the whole grid: single-buffer to save VMEM.
        w_spec = pl.BlockSpec((tile_no, d_in), lambda i, j: (j, 0),
                              pipeline_mode=pl.Buffered(1))
        b_spec = pl.BlockSpec((1, tile_no), lambda i, j: (0, j),
                              pipeline_mode=pl.Buffered(1))
    else:
        w_spec = pl.BlockSpec((tile_no, d_in), lambda i, j: (j, 0))
        b_spec = pl.BlockSpec((1, tile_no), lambda i, j: (0, j))
    o_spec = pl.BlockSpec((tile_n, tile_no), lambda i, j: (i, j))

    out2d = pl.pallas_call(
        _dense_kernel,
        out_shape=jax.ShapeDtypeStruct((N_p, d_out_p), x.dtype),
        grid_spec=pltpu.PrefetchScalarGridSpec(
            num_scalar_prefetch=0,
            grid=(n_i, n_j),
            in_specs=[x_spec, w_spec, b_spec],
            out_specs=o_spec,
        ),
        compiler_params=pltpu.CompilerParams(
            dimension_semantics=("parallel", "parallel"),
            vmem_limit_bytes=vmem_limit,
        ),
    )(x2d, w2d, b2d)

    out = out2d[:N, :d_out]
    return out.reshape(*lead, d_out)


if __name__ == "__main__":
    key = jax.random.PRNGKey(0)
    k_x, k_w, k_b = jax.random.split(key, 3)

    B, H, W = 2, 8, 8
    d_in, d_out = 32, 64

    x = jax.random.normal(k_x, (B, H, W, d_in), dtype=jnp.float32)

    # Deterministic params mirroring nn.Linear's shapes: weight (d_out, d_in), bias (d_out,)
    bound = 1.0 / math.sqrt(d_in)
    weight = jax.random.uniform(k_w, (d_out, d_in), minval=-bound, maxval=bound,
                                dtype=jnp.float32)
    bias = jax.random.uniform(k_b, (d_out,), minval=-bound, maxval=bound,
                              dtype=jnp.float32)

    y = position_feed_forward_2d(x, weight, bias)
    y = jax.block_until_ready(y)

    # Reference check (plain JAX)
    y_ref = jnp.einsum("bhwi,oi->bhwo", x, weight) + bias
    assert y.shape == (B, H, W, d_out)
    assert jnp.allclose(y, y_ref, atol=1e-5, rtol=1e-5)

    print("KERNEL_OK")
</pallas_src>

<mosaic_0001>
module attributes {stable_mosaic.version = 11 : i64} {
  func.func @_dense_kernel(%arg0: i32, %arg1: i32, %arg2: memref<64x32xf32, #tpu.memory_space<vmem>>, %arg3: memref<128x32xf32, #tpu.memory_space<vmem>>, %arg4: memref<1x128xf32, #tpu.memory_space<vmem>>, %arg5: memref<64x128xf32, #tpu.memory_space<vmem>>) attributes {dimension_semantics = [#tpu.dimension_semantics<parallel>, #tpu.dimension_semantics<parallel>], iteration_bounds = array<i64: 2, 1>, scalar_prefetch = 0 : i64, scratch_operands = 0 : i64, tpu.core_type = #tpu.core_type<tc>, window_params = [{transform_indices = @transform_0, window_bounds = array<i64: 64, 32>}, {pipeline_mode = #tpu.pipeline_mode<synchronous>, transform_indices = @transform_1, window_bounds = array<i64: 128, 32>}, {pipeline_mode = #tpu.pipeline_mode<synchronous>, transform_indices = @transform_2, window_bounds = array<i64: 1, 128>}, {transform_indices = @transform_3, window_bounds = array<i64: 64, 128>}]} {
    %c0 = arith.constant 0 : index
    %c0_0 = arith.constant 0 : index
    %0 = vector.load %arg2[%c0, %c0_0] : memref<64x32xf32, #tpu.memory_space<vmem>>, vector<64x32xf32>
    %c0_1 = arith.constant 0 : index
    %c0_2 = arith.constant 0 : index
    %1 = vector.load %arg3[%c0_1, %c0_2] : memref<128x32xf32, #tpu.memory_space<vmem>>, vector<128x32xf32>
    %cst = arith.constant dense<0.000000e+00> : vector<64x128xf32>
    %2 = tpu.matmul %0, %1, %cst {dimension_numbers = #tpu.dot_dimension_numbers<[1], [1], [0], [0], [0, 0, 1, 0], [], []>} : vector<64x32xf32>, vector<128x32xf32>, vector<64x128xf32> -> vector<64x128xf32>
    %c0_3 = arith.constant 0 : index
    %c0_4 = arith.constant 0 : index
    %3 = vector.load %arg4[%c0_3, %c0_4] : memref<1x128xf32, #tpu.memory_space<vmem>>, vector<1x128xf32>
    %4 = vector.broadcast %3 : vector<1x128xf32> to vector<64x128xf32>
    %5 = arith.addf %2, %4 : vector<64x128xf32>
    %c0_5 = arith.constant 0 : index
    %c0_6 = arith.constant 0 : index
    %6 = vector.load %arg5[%c0_5, %c0_6] : memref<64x128xf32, #tpu.memory_space<vmem>>, vector<64x128xf32>
    tpu.vector_store %arg5[%c0_5, %c0_6], %5 {strides = array<i32>} : memref<64x128xf32, #tpu.memory_space<vmem>>, vector<64x128xf32>,
    return
  }
  func.func @transform_0(%arg0: i32, %arg1: i32) -> (i32, i32) {
    %c0_i32 = arith.constant 0 : i32
    %c0_i32_0 = arith.constant 0 : i32
    return %arg0, %c0_i32 : i32, i32
  }
  func.func @transform_1(%arg0: i32, %arg1: i32) -> (i32, i32) {
    %c0_i32 = arith.constant 0 : i32
    %c0_i32_0 = arith.constant 0 : i32
    return %arg1, %c0_i32 : i32, i32
  }
  func.func @transform_2(%arg0: i32, %arg1: i32) -> (i32, i32) {
    %c0_i32 = arith.constant 0 : i32
    %c0_i32_0 = arith.constant 0 : i32
    return %c0_i32, %arg1 : i32, i32
  }
  func.func @transform_3(%arg0: i32, %arg1: i32) -> (i32, i32) {
    %c0_i32 = arith.constant 0 : i32
    return %arg0, %arg1 : i32, i32
  }
}

</mosaic_0001>

<bundles_post_ra>
// kernel: tpu_custom_call.1
= control target key start
LH: loop header
LB: loop body
LE: loop exit
PB: predicated region body
PF: predicated region fallthrough
CT: control target
= control target key end

     0   :  { %8 = vsyncpa [#allocation3], 0  ;;  %s1102_s0 = inlined_call_operand.vmem [shape: f32[128,32], index: 0, kind: input, shape index: {}]   ;;  %s1103_s1 = inlined_call_operand.vmem [shape: f32[128,32], index: 1, kind: input, shape index: {}]   ;;  %s1104_s2 = inlined_call_operand.vmem [shape: f32[1,128], index: 2, kind: input, shape index: {}]   ;;  %s1105_s3 = inlined_call_operand.hbm [shape: f32[128,128], index: 3, kind: output, shape index: {}]  }
   0x1   :  { %10 = vsyncpa [#allocation3 + $0x1], 0  ;;  %s852_s12 = smov 0   ;;  %s854_s13 = smov 0  }
   0x2   :  { %s856_s14 = smov 0   ;;  %s858_s15 = smov 0  }
   0x3   :  { %s860_s16 = smov 0   ;;  %s862_s17 = smov 0  }
   0x4 LB: > { %s553_s18 = sadd.s32 4294967295, %s827_s17   ;;  %s554_s19 = sadd.s32 4294967294, %s827_s17   ;;  %s827_s17 = sphi %s862_s17, %s16_s17   ;;  %s823_s16 = sphi %s860_s16, %s1112_s16   ;;  %s819_s15 = sphi %s858_s15, %s1111_s15   ;;  %s815_s14 = sphi %s856_s14, %s1110_s14   ;;  %s811_s13 = sphi %s854_s13, %s1109_s13   ;;  %s807_s12 = sphi %s852_s12, %s1108_s12  }
   0x5   : > { %s28_s20 = sadd.s32 1, %s823_s16  ;;  %s115_s21 = sadd.s32 1, %s815_s14 }
   0x6   : > { %p30_p0 = scmp.ge.s32.totalorder %s28_s20, 2  ;;  %p125_p1 = scmp.ne.s32.totalorder %s815_s14, %s811_s13 }
   0x7   : > { %p126_p2 = scmp.eq.s32.totalorder %s553_s18, 1  ;;  %p131_p3 = scmp.ne.s32.totalorder %s811_s13, %s807_s12 }
   0x8   : > { %s1114_s20 = smov (%p30_p0, %s28_s20), 0  ;;  %p132_p5 = scmp.eq.s32.totalorder %s554_s19, 1 }
   0x9   : > { %p892_p4 = por %p126_p2, %p125_p1  ;;  %s110_s23 = ssub.s32 %s823_s16, %s1114_s20 }
   0xa   : > { %p559_p6 = scmp.ge.s32.totalorder %s827_s17, 1  ;;  %p113_p7 = scmp.eq.s32.totalorder %s110_s23, 0 }
   0xb   : > { %p899_p8 = por %p132_p5, %p131_p3  ;;  %p174_p9 = scmp.lt.s32.totalorder %s827_s17, 3 }
   0xc   : > { %s905_s25 = scalar_select %p113_p7, %s815_s14, %s115_s21  }
   0xd   : > { %p175_p10 = pnand %p559_p6, %p174_p9 }
   0xe   : > { %s561_s30 = sshll.u32 (!%p175_p10), %s819_s15, 3  ;;  %s829_s21 = smov (!%p175_p10), [#allocation2]  }
   0xf   : > { %178 = sbr.rel (%p175_p10) target bundleno = 300 (0x12c), region = 32  ;;  %p207_p11 = scmp.lt.s32.totalorder (!%p175_p10), %s561_s30, 15 }
  0x10   : > { %s755_s23 = sshll.u32 (!%p175_p10), %s829_s21, 4  ;;  %s756_s23 = int_to_ptr.vmem [resolvable:$false] %s755_s23 }
  0x11   : > { %s757_s26 = scalar_lea.vmem (!%p175_p10), %s756_s23, 2048 }
  0x14   : > { %v245_v0 = vld [vmem:[%s1103_s1 + $0x78] sm:$0xff]  ;;  %vm253_vm0 = vcmask 261120   ;;  %v244_v1 = vld [vmem:[%s1103_s1 + $0x70] sm:$0xff]  ;;  %s1116_s30 = smov (!%p207_p11, %s561_s30), 15  ;;  %v243_v2 = vld [vmem:[%s1103_s1 + $0x68] sm:$0xff] }
  0x15   : > { %618 = vmatprep.subr.msk.mxu0 %vm253_vm0, %v245_v0  ;;  %662 = vmatprep.subr.msk.mxu1 %vm253_vm0, %v245_v0  ;;  %s562_s6 = sshll.u32 %s1116_s30, 3  ;;  %v242_v5 = vld [vmem:[%s1103_s1 + $0x60] sm:$0xff]  ;;  %v241_v6 = vld [vmem:[%s1103_s1 + $0x58] sm:$0xff]  ;;  %v240_v7 = vld [vmem:[%s1103_s1 + $0x50] sm:$0xff]  ;;  %s203_s30 = sand.u32 1, %s811_s13  }
  0x16   : > { %619 = vmatpush3.xpose.msk.msra.mxu0 %vm253_vm0, %v245_v0  ;;  %678 = vmatpush3.xpose.msk.msra.mxu1 %vm253_vm0, %v245_v0  ;;  %s928_s9 = scalar_lea.vmem %s1102_s0, %s562_s6  ;;  %v239_v8 = vld [vmem:[%s1103_s1 + $0x48] sm:$0xff]  ;;  %v238_v9 = vld [vmem:[%s1103_s1 + $0x40] sm:$0xff]  ;;  %v237_v10 = vld [vmem:[%s1103_s1 + $0x38] sm:$0xff]  ;;  %s560_s4 = sshll.u32 %s203_s30, 6 }
  0x17   : > { %620 = vmatprep.subr.msk.mxu0 %vm253_vm0, %v244_v1  ;;  %663 = vmatprep.subr.msk.mxu1 %vm253_vm0, %v244_v1  ;;  %v222_v3 = vld [vmem:[%s928_s9] sm:$0xff]  ;;  %v236_v11 = vld [vmem:[%s1103_s1 + $0x30] sm:$0xff]  ;;  %v235_v12 = vld [vmem:[%s1103_s1 + $0x28] sm:$0xff]  ;;  %s205_s7 = scalar_lea.vmem [#allocation2], %s560_s4 }
  0x18   : > { %v226_v4 = vld [vmem:[%s928_s9 + $0x20] sm:$0xff]  ;;  %650 = vmatprep.mubr.msk.f32.mxu0 %vm253_vm0, %v222_v3  ;;  %v233_v14 = vld [vmem:[%s1103_s1 + $0x18] sm:$0xff]  ;;  %v232_v15 = vld [vmem:[%s1103_s1 + $0x10] sm:$0xff]  ;;  %s454_s8 = sshll.u32 %s205_s7, 4  ;;  %s1053_s8 = int_to_ptr.vmem [resolvable:$true] %s454_s8 }
  0x19   : > { %656 = vmatprep.mubr.msk.f32.mxu1 %vm253_vm0, %v226_v4  ;;  %v234_v13 = vld [vmem:[%s1103_s1 + $0x20] sm:$0xff]  ;;  %v231_v16 = vld [vmem:[%s1103_s1 + $0x8] sm:$0xff]  ;;  %v224_v20 = vld [vmem:[%s928_s9 + $0x10] sm:$0xff]  ;;  %s751_s19 = scalar_lea.vmem %s1053_s8, 1024  ;;  %p758_p1 = scmp.lt.s32.totalorder %s1053_s8, %s756_s23 }
  0x1a   : > { %621 = vmatpush3.xpose.msk.msra.mxu0 %vm253_vm0, %v244_v1  ;;  %679 = vmatpush3.xpose.msk.msra.mxu1 %vm253_vm0, %v244_v1  ;;  %v230_v17 = vld [vmem:[%s1103_s1] sm:$0xff]  ;;  %v223_v18 = vld [vmem:[%s928_s9 + $0x8] sm:$0xff]  ;;  %v228_v21 = vld [vmem:[%s928_s9 + $0x30] sm:$0xff]  ;;  %p752_p12 = scmp.ne.s32.totalorder %s1053_s8, %s751_s19  ;;  %p759_p2 = scmp.lt.s32.totalorder %s757_s26, %s751_s19 }
  0x1b   : > { %622 = vmatprep.subr.msk.mxu0 %vm253_vm0, %v243_v2  ;;  %664 = vmatprep.subr.msk.mxu1 %vm253_vm0, %v243_v2  ;;  %v227_v19 = vld [vmem:[%s928_s9 + $0x28] sm:$0xff]  ;;  %v225_v22 = vld [vmem:[%s928_s9 + $0x18] sm:$0xff]  ;;  %v563_v24 = vld [vmem:[%s1104_s2] ss:$0 sm:$0xff] }
  0x1c   : > { %v229_v23 = vld [vmem:[%s928_s9 + $0x38] sm:$0xff]  ;;  %s593_s9 = sshll.u32 %s819_s15, 10  ;;  %s1057_s15 = scalar_lea.sflag [#allocation3], %s203_s30 }
  0x1d   : > { %s1051_s18 = scalar_lea.hbm %s1105_s3, %s593_s9  ;;  %p753_p13 = pnand %p752_p12, %p892_p4 }
  0x1e   : > { %623 = vmatpush3.xpose.msk.msra.mxu0 %vm253_vm0, %v243_v2  ;;  %680 = vmatpush3.xpose.msk.msra.mxu1 %vm253_vm0, %v243_v2  ;;  %p760_p3 = por %p759_p2, %p758_p1 }
  0x1f   : > { %624 = vmatprep.subr.msk.mxu0 %vm253_vm0, %v242_v5  ;;  %665 = vmatprep.subr.msk.mxu1 %vm253_vm0, %v242_v5  ;;  %p754_p0 = pneg %p753_p13 }
  0x21   : > { %p761_p5 = pnand %p760_p3, %p754_p0 }
  0x22   : > { %625 = vmatpush3.xpose.msk.msra.mxu0 %vm253_vm0, %v242_v5  ;;  %681 = vmatpush3.xpose.msk.msra.mxu1 %vm253_vm0, %v242_v5 }
  0x23   : > { %626 = vmatprep.subr.msk.mxu0 %vm253_vm0, %v241_v6  ;;  %666 = vmatprep.subr.msk.mxu1 %vm253_vm0, %v241_v6 }
  0x26   : > { %627 = vmatpush3.xpose.msk.msra.mxu0 %vm253_vm0, %v241_v6  ;;  %682 = vmatpush3.xpose.msk.msra.mxu1 %vm253_vm0, %v241_v6 }
  0x27   : > { %628 = vmatprep.subr.msk.mxu0 %vm253_vm0, %v240_v7  ;;  %667 = vmatprep.subr.msk.mxu1 %vm253_vm0, %v240_v7 }
  0x2a   : > { %629 = vmatpush3.xpose.msk.msra.mxu0 %vm253_vm0, %v240_v7  ;;  %683 = vmatpush3.xpose.msk.msra.mxu1 %vm253_vm0, %v240_v7 }
  0x2b   : > { %630 = vmatprep.subr.msk.mxu0 %vm253_vm0, %v239_v8  ;;  %668 = vmatprep.subr.msk.mxu1 %vm253_vm0, %v239_v8 }
  0x2e   : > { %631 = vmatpush3.xpose.msk.msra.mxu0 %vm253_vm0, %v239_v8  ;;  %684 = vmatpush3.xpose.msk.msra.mxu1 %vm253_vm0, %v239_v8 }
  0x2f   : > { %632 = vmatprep.subr.msk.mxu0 %vm253_vm0, %v238_v9  ;;  %669 = vmatprep.subr.msk.mxu1 %vm253_vm0, %v238_v9 }
  0x32   : > { %633 = vmatpush3.xpose.msk.msra.mxu0 %vm253_vm0, %v238_v9  ;;  %685 = vmatpush3.xpose.msk.msra.mxu1 %vm253_vm0, %v238_v9 }
  0x33   : > { %634 = vmatprep.subr.msk.mxu0 %vm253_vm0, %v237_v10  ;;  %670 = vmatprep.subr.msk.mxu1 %vm253_vm0, %v237_v10 }
  0x36   : > { %635 = vmatpush3.xpose.msk.msra.mxu0 %vm253_vm0, %v237_v10  ;;  %686 = vmatpush3.xpose.msk.msra.mxu1 %vm253_vm0, %v237_v10 }
  0x37   : > { %636 = vmatprep.subr.msk.mxu0 %vm253_vm0, %v236_v11  ;;  %671 = vmatprep.subr.msk.mxu1 %vm253_vm0, %v236_v11 }
  0x3a   : > { %637 = vmatpush3.xpose.msk.msra.mxu0 %vm253_vm0, %v236_v11  ;;  %687 = vmatpush3.xpose.msk.msra.mxu1 %vm253_vm0, %v236_v11 }
  0x3b   : > { %638 = vmatprep.subr.msk.mxu0 %vm253_vm0, %v235_v12  ;;  %672 = vmatprep.subr.msk.mxu1 %vm253_vm0, %v235_v12 }
  0x3e   : > { %639 = vmatpush3.xpose.msk.msra.mxu0 %vm253_vm0, %v235_v12  ;;  %688 = vmatpush3.xpose.msk.msra.mxu1 %vm253_vm0, %v235_v12 }
  0x3f   : > { %640 = vmatprep.subr.msk.mxu0 %vm253_vm0, %v234_v13  ;;  %673 = vmatprep.subr.msk.mxu1 %vm253_vm0, %v234_v13 }
  0x42   : > { %641 = vmatpush3.xpose.msk.msra.mxu0 %vm253_vm0, %v234_v13  ;;  %689 = vmatpush3.xpose.msk.msra.mxu1 %vm253_vm0, %v234_v13 }
  0x43   : > { %642 = vmatprep.subr.msk.mxu0 %vm253_vm0, %v233_v14  ;;  %674 = vmatprep.subr.msk.mxu1 %vm253_vm0, %v233_v14 }
  0x46   : > { %643 = vmatpush3.xpose.msk.msra.mxu0 %vm253_vm0, %v233_v14  ;;  %690 = vmatpush3.xpose.msk.msra.mxu1 %vm253_vm0, %v233_v14 }
  0x47   : > { %644 = vmatprep.subr.msk.mxu0 %vm253_vm0, %v232_v15  ;;  %675 = vmatprep.subr.msk.mxu1 %vm253_vm0, %v232_v15 }
  0x4a   : > { %645 = vmatpush3.xpose.msk.msra.mxu0 %vm253_vm0, %v232_v15  ;;  %691 = vmatpush3.xpose.msk.msra.mxu1 %vm253_vm0, %v232_v15 }
  0x4b   : > { %646 = vmatprep.subr.msk.mxu0 %vm253_vm0, %v231_v16  ;;  %676 = vmatprep.subr.msk.mxu1 %vm253_vm0, %v231_v16 }
  0x4e   : > { %647 = vmatpush3.xpose.msk.msra.mxu0 %vm253_vm0, %v231_v16  ;;  %692 = vmatpush3.xpose.msk.msra.mxu1 %vm253_vm0, %v231_v16 }
  0x4f   : > { %648 = vmatprep.subr.msk.mxu0 %vm253_vm0, %v230_v17  ;;  %677 = vmatprep.subr.msk.mxu1 %vm253_vm0, %v230_v17 }
  0x52   : > { %649 = vmatpush3.xpose.msk.msra.mxu0 %vm253_vm0, %v230_v17  ;;  %693 = vmatpush3.xpose.msk.msra.mxu1 %vm253_vm0, %v230_v17 }
  0x55   : > { %651 = vmatmul.mubr.msk.f32.vlgmr.msra.gmra.mxu0 %vm253_vm0, %v223_v18  ;;  %657 = vmatmul.mubr.msk.f32.vlgmr.msra.gmra.mxu1 %vm253_vm0, %v227_v19 }
  0x56   : > { %653 = vmatprep.mubr.msk.f32.mxu0 %vm253_vm0, %v224_v20  ;;  %659 = vmatprep.mubr.msk.f32.mxu1 %vm253_vm0, %v228_v21 }
  0x59   : > { %654 = vmatmul.mubr.msk.f32.gmra.mxu0 %vm253_vm0, %v225_v22  ;;  %660 = vmatmul.mubr.msk.f32.gmra.mxu1 %vm253_vm0, %v229_v23 }
 0x115   : > { %v652_v25 = vpop.f32.mrf.mxu0  ;;  %v658_v26 = vpop.f32.mrf.mxu1 }
 0x116   : > { %v398_v27 = vadd.f32 %v652_v25, %v563_v24  ;;  %v418_v28 = vadd.f32 %v658_v26, %v563_v24 }
 0x117   : > { %v392_v29 = vpop.f32.mrf.mxu0  ;;  %v412_v30 = vpop.f32.mrf.mxu1 }
 0x118   : > { %432 = vst [vmem:[%s205_s7 + $0x8] sm:$0xff] %v398_v27  ;;  %436 = vst [vmem:[%s205_s7 + $0x28] sm:$0xff] %v418_v28  ;;  %v393_v31 = vadd.f32 %v563_v24, %v392_v29  ;;  %v413_v32 = vadd.f32 %v563_v24, %v412_v30 }
 0x119   : > { %v655_v33 = vpop.f32.mrf.mxu0  ;;  %v661_v34 = vpop.f32.mrf.mxu1 }
 0x11a   : > { %431 = vst [vmem:[%s205_s7] sm:$0xff] %v393_v31  ;;  %435 = vst [vmem:[%s205_s7 + $0x20] sm:$0xff] %v413_v32  ;;  %v408_v35 = vadd.f32 %v655_v33, %v563_v24  ;;  %v428_v36 = vadd.f32 %v661_v34, %v563_v24 }
 0x11b   : > { %v402_v37 = vpop.f32.mrf.mxu0  ;;  %v422_v38 = vpop.f32.mrf.mxu1 }
 0x11c   : > { %434 = vst [vmem:[%s205_s7 + $0x18] sm:$0xff] %v408_v35  ;;  %438 = vst [vmem:[%s205_s7 + $0x38] sm:$0xff] %v428_v36  ;;  %v403_v39 = vadd.f32 %v563_v24, %v402_v37  ;;  %v423_v40 = vadd.f32 %v563_v24, %v422_v38 }
 0x11e   : > { %433 = vst [vmem:[%s205_s7 + $0x10] sm:$0xff] %v403_v39  ;;  %437 = vst [vmem:[%s205_s7 + $0x30] sm:$0xff] %v423_v40 }
 0x11f   : > { %764 = shalt.err (!%p761_p5)
}
 0x120   : > { %s765_s27 = scalar_lea.hbm %s1051_s18, 1024  ;;  %s769_s30 = scalar_lea.hbm %s1105_s3, 2048 }
 0x121   : > { %p766_p6 = scmp.ne.s32.totalorder %s1051_s18, %s765_s27  ;;  %p770_p10 = scmp.lt.s32.totalorder %s1051_s18, %s1105_s3 }
 0x122   : > { %p771_p11 = scmp.lt.s32.totalorder %s769_s30, %s765_s27 }
 0x123   : > { %p767_p7 = pnand %p766_p6, %p892_p4 }
 0x124   : > { %p772_p12 = por %p771_p11, %p770_p10 }
 0x125   : > { %p768_p9 = pneg %p767_p7 }
 0x127   : > { %p773_p13 = pnand %p772_p12, %p768_p9 }
 0x129   : > { %776 = shalt.err (!%p773_p13)
}
 0x12a   : > { %s830_s6 = smov 128   ;;  %s831_s7 = smov 8  }
 0x12b   : > { %694 = dma.vmem_to_hbm [thread:$0]  (%p892_p4), %s1053_s8, 1024, %s1051_s18, %s1057_s15, %s830_s6, %s830_s6, %s831_s7  }
 0x12c PF: > { %p700_p0 = scmp.ge.s32.totalorder %s827_s17, 2  ;;  %s469_s9 = sand.u32 1, %s807_s12  }
 0x12d   : > { %s470_s10 = scalar_lea.sflag [#allocation3], %s469_s9 }
 0x12e   : > { %p697_p1 = pnand %p700_p0, %p899_p8 }
 0x130   : > { %p698_p2 = pneg %p697_p1 }
 0x132   : > { %802 = dma.done.wait (%p698_p2), %s470_s10, 1024  }
 0x133   : > { %804 = vsyncadd (%p698_p2), %s470_s10, 4294966272  ;;  %s16_s17 = sadd.s32 1, %s827_s17   ;;  %s1108_s12 = smov %s811_s13 }
 0x134   : > { %p13_p3 = scmp.ge.s32.totalorder %s16_s17, 4   ;;  %s1109_s13 = smov %s815_s14 }
 0x135   : > { %s1110_s14 = smov %s905_s25  ;;  %s1111_s15 = smov %s823_s16 }
 0x136   : > { %s1112_s16 = smov %s1114_s20  ;;  %15 = sbr.rel (!%p13_p3) target bundleno = 4 (0x4), region = 73 }
 0x13b   :  { %475 = vsyncpa [#allocation3], 1 }
 0x13c   :  { %477 = vsyncpa [#allocation3 + $0x1], 1 }

</bundles_post_ra>
